<compile_context>
chip_gen: v6e
topology: v6e:2x2x1
jax: 0.10.0
libtpu: 0.0.40
codegen_flags: <defaults>
</compile_context>

<pallas_src>
import jax
import jax.numpy as jnp
from jax.experimental import pallas as pl
from jax.experimental.pallas import tpu as pltpu


def _round_up(x: int, m: int) -> int:
    return -(-x // m) * m


def _fused_proj_kernel(x_ref, w_ref, o_ref):
    # x_ref: (tile_p, pack*Daug)   w_ref: (pack*Daug, pack*E)  [block-diagonal, resident]
    # o_ref: (tile_p, pack*E)      -- lane-dense (128 lanes when E divides 128)
    o_ref[...] = jnp.dot(
        x_ref[...], w_ref[...], preferred_element_type=jnp.float32
    ).astype(o_ref.dtype)


def pf_merger_forward(track, track_data_mask, tower, tower_data_mask, params,
                      *, row_tile=4096, use_bf16=True):
    """JAX/Pallas equivalent of PFMerger.forward.

    track:  (B, Lt, track_dim) float32       tower: (B, Lw, tower_dim) float32
    masks:  (B, Lt) / (B, Lw) bool
    params: PyTorch Linear layout -- weight (E, Din), bias (E,)
    Returns (z, data_mask): z (B, Lt+Lw, E) float32, data_mask (B, Lt+Lw) bool.
    """
    B, Lt, Dt = track.shape
    _, Lw, Dw = tower.shape
    E = int(params["track_b"].shape[0])
    Ltot = Lt + Lw
    R = B * Ltot

    compute_dtype = jnp.bfloat16 if use_bf16 else jnp.float32

    # ---- augmented, pre-masked, segment-tagged input (narrow; cheap XLA glue) ----
    # columns: [track feats (Dt) | tower feats (Dw) | is_track | is_tower | pad]
    Daug = _round_up(Dt + Dw + 2, 8)

    # NaN-safe mask-fill: zero the whole row (features AND the bias-indicator column)
    # of padded positions BEFORE the matmul, so the kernel output is exactly 0 there.
    mtrack = jnp.where(track_data_mask[..., None], track, 0.0)
    mtower = jnp.where(tower_data_mask[..., None], tower, 0.0)

    x_aug = jnp.zeros((B, Ltot, Daug), jnp.float32)
    x_aug = x_aug.at[:, :Lt, :Dt].set(mtrack)
    x_aug = x_aug.at[:, Lt:, Dt:Dt + Dw].set(mtower)
    x_aug = x_aug.at[:, :Lt, Dt + Dw].set(track_data_mask.astype(jnp.float32))
    x_aug = x_aug.at[:, Lt:, Dt + Dw + 1].set(tower_data_mask.astype(jnp.float32))
    x_aug = x_aug.reshape(R, Daug).astype(compute_dtype)

    # ---- fused affine weight: [Wt^T ; Ww^T ; b_track ; b_tower ; 0] ----
    w_aug = jnp.zeros((Daug, E), jnp.float32)
    w_aug = w_aug.at[0:Dt].set(params["track_w"].T)
    w_aug = w_aug.at[Dt:Dt + Dw].set(params["tower_w"].T)
    w_aug = w_aug.at[Dt + Dw].set(params["track_b"])
    w_aug = w_aug.at[Dt + Dw + 1].set(params["tower_b"])

    # ---- lane-dense packing: `pack` sequence rows per stored 128-lane row ----
    pack = 128 // E if (E < 128 and 128 % E == 0) else 1
    unit = 8 * pack                                   # tile granularity in sequence rows
    row_tile = max(unit, min(_round_up(row_tile, unit), _round_up(R, unit)))
    R_pad = _round_up(R, row_tile)
    if R_pad > R:
        x_aug = jnp.pad(x_aug, ((0, R_pad - R), (0, 0)))  # zero rows -> zero outputs

    w_big = jnp.kron(jnp.eye(pack, dtype=jnp.float32), w_aug).astype(compute_dtype)
    x_packed = x_aug.reshape(R_pad // pack, pack * Daug)       # free row-major reshape

    n_tiles = R_pad // row_tile
    tile_p = row_tile // pack                                  # packed rows per tile (mult of 8)

    cost = pl.CostEstimate(
        flops=2 * R_pad * Daug * E,
        transcendentals=0,
        bytes_accessed=int(x_packed.size) * x_packed.dtype.itemsize
                       + int(w_big.size) * w_big.dtype.itemsize
                       + R_pad * E * 4,
    )

    out = pl.pallas_call(
        _fused_proj_kernel,
        out_shape=jax.ShapeDtypeStruct((R_pad // pack, pack * E), jnp.float32),
        grid_spec=pltpu.PrefetchScalarGridSpec(
            num_scalar_prefetch=0,
            grid=(n_tiles,),
            in_specs=[
                pl.BlockSpec((tile_p, pack * Daug), lambda i: (i, 0)),
                pl.BlockSpec((pack * Daug, pack * E), lambda i: (0, 0)),  # resident weight
            ],
            out_specs=pl.BlockSpec((tile_p, pack * E), lambda i: (i, 0)),
        ),
        compiler_params=pltpu.CompilerParams(
            dimension_semantics=("parallel",),        # megacore sharding on v7x
            vmem_limit_bytes=32 * 1024 * 1024,        # explicit budget, safe on v5e/v6e/v7x
        ),
        cost_estimate=cost,
    )(x_packed, w_big)

    # Free metadata reshape back to (B, Lt+Lw, E); drop row padding if any.
    z = out.reshape(R_pad, E)[:R].reshape(B, Ltot, E)
    data_mask = jnp.concatenate([track_data_mask, tower_data_mask], axis=1)
    return z, data_mask


def _reference_forward(track, track_data_mask, tower, tower_data_mask, params):
    z_track = track @ params["track_w"].T + params["track_b"]
    z_tower = tower @ params["tower_w"].T + params["tower_b"]
    z = jnp.concatenate([z_track, z_tower], axis=1)
    data_mask = jnp.concatenate([track_data_mask, tower_data_mask], axis=1)
    z = jnp.where(data_mask[..., None], z, 0.0)
    return z, data_mask


if __name__ == "__main__":
    B = 2
    L_track, L_tower = 8, 8
    track_dim, tower_dim, embed_dim = 6, 5, 32

    key = jax.random.PRNGKey(0)
    k = jax.random.split(key, 8)

    # Deterministic parameter init (PyTorch Linear layout: weight (out, in), bias (out,)).
    params = {
        "track_w": jax.random.normal(k[0], (embed_dim, track_dim), jnp.float32) * 0.1,
        "track_b": jax.random.normal(k[1], (embed_dim,), jnp.float32) * 0.1,
        "tower_w": jax.random.normal(k[2], (embed_dim, tower_dim), jnp.float32) * 0.1,
        "tower_b": jax.random.normal(k[3], (embed_dim,), jnp.float32) * 0.1,
    }

    track = jax.random.normal(k[4], (B, L_track, track_dim), jnp.float32)
    tower = jax.random.normal(k[5], (B, L_tower, tower_dim), jnp.float32)
    track_data_mask = jax.random.bernoulli(k[6], 0.7, (B, L_track))
    tower_data_mask = jax.random.bernoulli(k[7], 0.7, (B, L_tower))

    z_ref, mask_ref = _reference_forward(track, track_data_mask, tower,
                                         tower_data_mask, params)

    # Exact f32 path.
    z32, dm32 = pf_merger_forward(track, track_data_mask, tower, tower_data_mask,
                                  params, use_bf16=False)
    jax.block_until_ready(z32)
    jax.block_until_ready(dm32)
    assert z32.shape == (B, L_track + L_tower, embed_dim)
    assert dm32.shape == (B, L_track + L_tower)
    assert jnp.allclose(z32, z_ref, atol=1e-4, rtol=1e-4)
    assert jnp.array_equal(dm32, mask_ref)

    # Default fast path: bf16 operands, f32 accumulation (looser tolerance).
    z16, dm16 = pf_merger_forward(track, track_data_mask, tower, tower_data_mask,
                                  params, use_bf16=True)
    jax.block_until_ready(z16)
    jax.block_until_ready(dm16)
    assert z16.shape == (B, L_track + L_tower, embed_dim)
    assert jnp.allclose(z16, z_ref, atol=3e-2, rtol=3e-2)
    assert jnp.array_equal(dm16, mask_ref)

    print("KERNEL_OK")
</pallas_src>

<mosaic_0001>
module attributes {stable_mosaic.version = 11 : i64} {
  func.func @_fused_proj_kernel(%arg0: i32, %arg1: memref<8x64xf32, #tpu.memory_space<vmem>>, %arg2: memref<64x128xf32, #tpu.memory_space<vmem>>, %arg3: memref<8x128xf32, #tpu.memory_space<vmem>>) attributes {dimension_semantics = [#tpu.dimension_semantics<parallel>], iteration_bounds = array<i64: 1>, scalar_prefetch = 0 : i64, scratch_operands = 0 : i64, tpu.core_type = #tpu.core_type<tc>, window_params = [{transform_indices = @transform_0, window_bounds = array<i64: 8, 64>}, {pipeline_mode = #tpu.pipeline_mode<synchronous>, transform_indices = @transform_1, window_bounds = array<i64: 64, 128>}, {transform_indices = @transform_2, window_bounds = array<i64: 8, 128>}]} {
    %c0 = arith.constant 0 : index
    %c0_0 = arith.constant 0 : index
    %0 = vector.load %arg1[%c0, %c0_0] : memref<8x64xf32, #tpu.memory_space<vmem>>, vector<8x64xf32>
    %c0_1 = arith.constant 0 : index
    %c0_2 = arith.constant 0 : index
    %1 = vector.load %arg2[%c0_1, %c0_2] : memref<64x128xf32, #tpu.memory_space<vmem>>, vector<64x128xf32>
    %cst = arith.constant dense<0.000000e+00> : vector<8x128xf32>
    %2 = tpu.matmul %0, %1, %cst {dimension_numbers = #tpu.dot_dimension_numbers<[1], [0], [0], [1], [0, 0, 1, 1], [], []>} : vector<8x64xf32>, vector<64x128xf32>, vector<8x128xf32> -> vector<8x128xf32>
    %c0_3 = arith.constant 0 : index
    %c0_4 = arith.constant 0 : index
    %3 = vector.load %arg3[%c0_3, %c0_4] : memref<8x128xf32, #tpu.memory_space<vmem>>, vector<8x128xf32>
    tpu.vector_store %arg3[%c0_3, %c0_4], %2 {strides = array<i32>} : memref<8x128xf32, #tpu.memory_space<vmem>>, vector<8x128xf32>,
    return
  }
  func.func @transform_0(%arg0: i32) -> (i32, i32) {
    %c0_i32 = arith.constant 0 : i32
    %c0_i32_0 = arith.constant 0 : i32
    return %arg0, %c0_i32 : i32, i32
  }
  func.func @transform_1(%arg0: i32) -> (i32, i32) {
    %c0_i32 = arith.constant 0 : i32
    %c0_i32_0 = arith.constant 0 : i32
    %c0_i32_1 = arith.constant 0 : i32
    return %c0_i32, %c0_i32_0 : i32, i32
  }
  func.func @transform_2(%arg0: i32) -> (i32, i32) {
    %c0_i32 = arith.constant 0 : i32
    %c0_i32_0 = arith.constant 0 : i32
    return %arg0, %c0_i32 : i32, i32
  }
}

</mosaic_0001>

<bundles_post_ra>
// kernel: tpu_custom_call.1
= control target key start
LH: loop header
LB: loop body
LE: loop exit
PB: predicated region body
PF: predicated region fallthrough
CT: control target
= control target key end

     0   :  { %7 = vsyncpa [#allocation3], 0  ;;  %s271_s0 = inlined_call_operand.hbm [shape: f32[8,64], index: 0, kind: input, shape index: {}]   ;;  %s272_s1 = inlined_call_operand.hbm [shape: f32[64,128], index: 1, kind: input, shape index: {}]   ;;  %s273_s2 = inlined_call_operand.hbm [shape: f32[8,128], index: 2, kind: output, shape index: {}]  }
   0x1   :  { %8 = vsyncpa [#allocation6], 0 }
   0x2   :  { %9 = vsyncpa [#allocation4], 0  ;;  %s240_s9 = smov [#allocation2]   ;;  %s241_s11 = smov [#allocation5]  }
   0x3   :  { %s16_s10 = sshll.u32 %s240_s9, 4  ;;  %s25_s12 = sshll.u32 %s241_s11, 4  ;;  %s17_s10 = int_to_ptr.vmem [resolvable:$true] %s16_s10  ;;  %s26_s12 = int_to_ptr.vmem [resolvable:$true] %s25_s12 }
   0x4   :  { %s182_s13 = scalar_lea.vmem %s17_s10, 128  ;;  %p187_p1 = scmp.lt.s32.totalorder %s17_s10, %s17_s10 }
   0x5   :  { %p183_p0 = scmp.ne.s32.totalorder %s17_s10, %s182_s13  ;;  %p188_p2 = scmp.lt.s32.totalorder %s182_s13, %s182_s13 }
   0x7   :  { %p189_p3 = por %p188_p2, %p187_p1 }
   0x9   :  { %p190_p4 = pnand %p189_p3, %p183_p0 }
   0xb   :  { %193 = shalt.err (!%p190_p4)
}
   0xc   :  { %19 = dma.hbm_to_vmem [thread:$0]  %s271_s0, 128, %s17_s10, [#allocation3]  }
   0xd   :  { %s202_s16 = scalar_lea.vmem %s26_s12, 1024  ;;  %p207_p6 = scmp.lt.s32.totalorder %s26_s12, %s26_s12 }
   0xe   :  { %p203_p5 = scmp.ne.s32.totalorder %s26_s12, %s202_s16  ;;  %p208_p7 = scmp.lt.s32.totalorder %s202_s16, %s202_s16 }
  0x10   :  { %p209_p8 = por %p208_p7, %p207_p6 }
  0x12   :  { %p210_p9 = pnand %p209_p8, %p203_p5 }
  0x14   :  { %213 = shalt.err (!%p210_p9)
}
  0x15   :  { %s242_s17 = smov 128   ;;  %s243_s18 = smov 8  }
  0x16   :  { %31 = dma.hbm_to_vmem [thread:$0]  %s272_s1, 1024, %s26_s12, [#allocation6], %s242_s17, %s242_s17, %s243_s18  }
  0x17   :  { %234 = dma.done.wait [#allocation3], 128  }
  0x18   :  { %235 = vsyncadd [#allocation3], 4294967168 }
  0x19   :  { %236 = dma.done.wait [#allocation6], 1024  }
  0x1a   :  { %237 = vsyncadd [#allocation6], 4294966272  ;;  %v244_v0 = vmov 0.0   ;;  %vm245_vm0 = vmmov 0   ;;  %v46_v1 = vld [vmem:[#allocation5 + $0x38] sm:$0xff]  ;;  %v45_v2 = vld [vmem:[#allocation5 + $0x30] sm:$0xff] }
  0x1b   :  { %148 = vmatprep.subr.mxu0 %v244_v0  ;;  %164 = vmatprep.mubr.msk.f32.mxu0 %vm245_vm0, %v244_v0  ;;  %v44_v3 = vld [vmem:[#allocation5 + $0x28] sm:$0xff]  ;;  %v43_v4 = vld [vmem:[#allocation5 + $0x20] sm:$0xff]  ;;  %v42_v5 = vld [vmem:[#allocation5 + $0x18] sm:$0xff]  ;;  %vm47_vm1 = vcmask 523264   ;;  %s246_s0 = smov [#allocation7]  }
  0x1c   :  { %149 = vmatpush3.msra.mxu0 %v46_v1  ;;  %v41_v6 = vld [vmem:[#allocation5 + $0x10] sm:$0xff]  ;;  %v40_v7 = vld [vmem:[#allocation5 + $0x8] sm:$0xff]  ;;  %v39_v8 = vld [vmem:[#allocation5] sm:$0xff]  ;;  %s128_s1 = sshll.u32 %s246_s0, 4  ;;  %s129_s1 = int_to_ptr.vmem [resolvable:$true] %s128_s1 }
  0x1d   :  { %150 = vmatprep.subr.mxu0 %v244_v0  ;;  %v38_v9 = vld [vmem:[#allocation2] sm:$0xff]  ;;  %s214_s21 = scalar_lea.vmem %s129_s1, 128  ;;  %p219_p11 = scmp.lt.s32.totalorder %s129_s1, %s129_s1 }
  0x1e   :  { %151 = vmatpush3.msra.mxu0 %v45_v2  ;;  %p215_p10 = scmp.ne.s32.totalorder %s129_s1, %s214_s21  ;;  %p220_p12 = scmp.lt.s32.totalorder %s214_s21, %s214_s21 }
  0x1f   :  { %152 = vmatprep.subr.mxu0 %v244_v0 }
  0x20   :  { %153 = vmatpush3.msra.mxu0 %v44_v3  ;;  %p221_p13 = por %p220_p12, %p219_p11 }
  0x21   :  { %154 = vmatprep.subr.mxu0 %v244_v0 }
  0x22   :  { %155 = vmatpush3.msra.mxu0 %v43_v4  ;;  %p222_p0 = pnand %p221_p13, %p215_p10 }
  0x23   :  { %156 = vmatprep.subr.mxu0 %v244_v0 }
  0x24   :  { %157 = vmatpush3.msra.mxu0 %v42_v5 }
  0x25   :  { %158 = vmatprep.subr.mxu0 %v244_v0 }
  0x26   :  { %159 = vmatpush3.msra.mxu0 %v41_v6 }
  0x27   :  { %160 = vmatprep.subr.mxu0 %v244_v0 }
  0x28   :  { %161 = vmatpush3.msra.mxu0 %v40_v7 }
  0x29   :  { %162 = vmatprep.subr.mxu0 %v244_v0 }
  0x2a   :  { %163 = vmatpush3.msra.mxu0 %v39_v8 }
  0x2b   :  { %165 = vmatmul.mubr.msk.f32.vlgmr.msra.gmra.mxu0 %vm47_vm1, %v38_v9 }
  0xeb   :  { %v117_v10 = vpop.f32.mrf.mxu0 }
  0xec   :  { %121 = vst [vmem:[#allocation7] sm:$0xff] %v117_v10 }
  0xed   :  { %v166_v11 = vpop.f32.mrf.mxu0 }
  0xee   :  { %225 = shalt.err (!%p222_p0)
}
  0xef   :  { %131 = dma.vmem_to_hbm [thread:$0]  %s129_s1, 128, %s273_s2, [#allocation4]  }
  0xf0   :  { %238 = dma.done.wait [#allocation4], 128  }
  0xf1   :  { %239 = vsyncadd [#allocation4], 4294967168 }
  0xf2   :  { %135 = vsyncpa [#allocation3], 1 }
  0xf3   :  { %136 = vsyncpa [#allocation6], 1 }
  0xf4   :  { %137 = vsyncpa [#allocation4], 1 }

</bundles_post_ra>
